<compile_context>
chip_gen: v6e
topology: v6e:2x2x1
jax: 0.10.0
libtpu: 0.0.40
codegen_flags: <defaults>
</compile_context>

<pallas_src>
import functools

import jax
import jax.numpy as jnp
from jax import lax
from jax.experimental import pallas as pl
from jax.experimental.pallas import tpu as pltpu


def _round_up(x, m):
    return (x + m - 1) // m * m


def _submconv_kernel(nbr_ref, feat_ref, w_ref, b_ref, out_ref, gbuf_ref, *,
                     taps, cin):
    """One tile of output rows.

    nbr_ref : SMEM [n_out_pad*T] int32 flattened rulebook; invalid taps are
              already remapped to a guaranteed all-zero feature row.
    feat_ref: VMEM [n_feat, C]      all active-site features (f32, zero row @ N)
    w_ref   : VMEM [TC_pad, K_pad]  fused weights (bf16), zero-padded rows
    b_ref   : VMEM [1, K_pad]       bias (f32)
    out_ref : VMEM [TM, K_pad]
    gbuf_ref: VMEM [TM, TC_pad]     gathered "im2col" tile (f32 scratch)
    """
    tm = out_ref.shape[0]
    base = pl.program_id(0) * (tm * taps)

    # Zero the gather buffer once per tile (covers lane padding beyond T*C).
    gbuf_ref[...] = jnp.zeros_like(gbuf_ref)

    def gather_row(j, carry):
        off = base + j * taps
        for t in range(taps):                                  # static unroll
            src = nbr_ref[off + t]                             # neighbor row id
            gbuf_ref[pl.ds(j, 1), pl.ds(t * cin, cin)] = feat_ref[pl.ds(src, 1), :]
        return carry

    lax.fori_loop(0, tm, gather_row, 0)

    # Single fused lane-aligned contraction over all taps & input channels.
    lhs = gbuf_ref[...].astype(w_ref.dtype)
    acc = jnp.dot(lhs, w_ref[...], preferred_element_type=jnp.float32)
    out_ref[...] = (acc + b_ref[...]).astype(out_ref.dtype)


def naive_submconv2d_pallas(features, indices, spatial_shape, batch_size,
                            weight, bias, stride=(1, 1), padding=(0, 0),
                            dilation=(1, 1), block_rows=256,
                            mxu_dtype=jnp.bfloat16):
    """Submanifold sparse conv2d. Returns (out_features, out_indices, P, Q)."""
    H, W = spatial_shape
    K, R, S, C = weight.shape
    str_h, str_w = stride
    pad_h, pad_w = padding
    dil_h, dil_w = dilation
    T = R * S
    N = features.shape[0]

    P = (H + 2 * pad_h - dil_h * (R - 1) - 1) // str_h + 1
    Q = (W + 2 * pad_w - dil_w * (S - 1) - 1) // str_w + 1

    # ---- glue (plain JAX): rulebook = per-row / per-tap neighbor row ids -----
    b = indices[:, 0]
    h = indices[:, 1]
    w = indices[:, 2]
    lut = jnp.full((batch_size, H, W), -1, dtype=jnp.int32)
    lut = lut.at[b, h, w].set(jnp.arange(N, dtype=jnp.int32))

    zero_row = jnp.int32(N)                  # feature row N is guaranteed zero
    nbr_cols = []
    for r in range(R):
        for s in range(S):
            h_in = h * str_h - pad_h + r * dil_h
            w_in = w * str_w - pad_w + s * dil_w
            valid = (h_in >= 0) & (h_in < H) & (w_in >= 0) & (w_in < W)
            nbr = jnp.where(
                valid,
                lut[b, jnp.clip(h_in, 0, H - 1), jnp.clip(w_in, 0, W - 1)],
                -1)
            nbr_cols.append(jnp.where(nbr >= 0, nbr, zero_row).astype(jnp.int32))
    nbr_idx = jnp.stack(nbr_cols, axis=1)                    # [N, T]

    # ---- padding: rows for the tile grid, channels to full lanes -------------
    block_rows = int(min(block_rows, max(8, _round_up(N, 8))))
    num_tiles = int(pl.cdiv(N, block_rows))
    n_out_pad = num_tiles * block_rows

    n_feat = _round_up(N + 1, 8)             # at least one all-zero row (id N)
    feats_p = jnp.zeros((n_feat, C), jnp.float32).at[:N].set(
        features.astype(jnp.float32))

    idx_p = jnp.full((n_out_pad, T), zero_row, jnp.int32).at[:N].set(nbr_idx)
    nbr_flat = idx_p.reshape(-1)                              # [n_out_pad * T]

    K_pad = _round_up(K, 128)                 # lane-dense output stores
    TC = T * C
    TC_pad = _round_up(TC, 128)               # lane-aligned fused contraction
    w2 = jnp.transpose(weight, (1, 2, 3, 0)).reshape(TC, K)   # (r,s,c)-major
    w_fused = jnp.zeros((TC_pad, K_pad), mxu_dtype).at[:TC, :K].set(
        w2.astype(mxu_dtype))
    if bias is None:
        b_vec = jnp.zeros((1, K_pad), jnp.float32)
    else:
        b_vec = jnp.zeros((1, K_pad), jnp.float32).at[0, :K].set(
            bias.astype(jnp.float32))

    # ---- VMEM budget (double-buffered pipeline blocks + scratch) -------------
    lane = 128
    itemsize = jnp.dtype(mxu_dtype).itemsize
    est = (2 * n_feat * max(lane, _round_up(C, lane)) * 4     # features block
           + 2 * TC_pad * K_pad * itemsize                    # weights block
           + 2 * 8 * K_pad * 4                                # bias block
           + 2 * block_rows * K_pad * 4                       # output tile
           + block_rows * TC_pad * 4)                         # gather scratch
    vmem_limit = int(min(max(2 * est, 16 * 2**20), 32 * 2**20))

    kernel = functools.partial(_submconv_kernel, taps=T, cin=C)
    out = pl.pallas_call(
        kernel,
        out_shape=jax.ShapeDtypeStruct((n_out_pad, K_pad), jnp.float32),
        grid_spec=pltpu.PrefetchScalarGridSpec(
            num_scalar_prefetch=1,                            # rulebook -> SMEM
            grid=(num_tiles,),
            in_specs=[
                pl.BlockSpec((n_feat, C), lambda i, nbr: (0, 0)),     # features
                pl.BlockSpec((TC_pad, K_pad), lambda i, nbr: (0, 0)),  # weights
                pl.BlockSpec((1, K_pad), lambda i, nbr: (0, 0)),       # bias
            ],
            out_specs=pl.BlockSpec((block_rows, K_pad), lambda i, nbr: (i, 0)),
            scratch_shapes=[pltpu.VMEM((block_rows, TC_pad), jnp.float32)],
        ),
        compiler_params=pltpu.CompilerParams(
            dimension_semantics=("parallel",),
            vmem_limit_bytes=vmem_limit),
    )(nbr_flat, feats_p, w_fused, b_vec)

    out_features = out[:N, :K].astype(features.dtype)
    out_indices = indices                                     # submanifold: unchanged
    return out_features, out_indices, P, Q


def reference_submconv2d(features, indices, H, W, batch_size, weight, bias,
                         stride, padding, dilation):
    """Pure-JAX reference via dense scatter/gather."""
    K, R, S, C = weight.shape
    str_h, str_w = stride
    pad_h, pad_w = padding
    dil_h, dil_w = dilation
    N = features.shape[0]
    bi, hi, wi = indices[:, 0], indices[:, 1], indices[:, 2]
    dense = jnp.zeros((batch_size, H, W, C), features.dtype).at[bi, hi, wi].set(features)
    active = jnp.zeros((batch_size, H, W), bool).at[bi, hi, wi].set(True)
    out = jnp.zeros((N, K), jnp.float32)
    for r in range(R):
        for s in range(S):
            h_in = hi * str_h - pad_h + r * dil_h
            w_in = wi * str_w - pad_w + s * dil_w
            valid = (h_in >= 0) & (h_in < H) & (w_in >= 0) & (w_in < W)
            hc = jnp.clip(h_in, 0, H - 1)
            wc = jnp.clip(w_in, 0, W - 1)
            f = dense[bi, hc, wc]                             # [N, C]
            act = active[bi, hc, wc] & valid
            f = jnp.where(act[:, None], f, 0.0)
            out = out + f @ weight[:, r, s, :].T
    if bias is not None:
        out = out + bias
    return out


if __name__ == "__main__":
    key = jax.random.PRNGKey(0)
    B, H, W = 2, 16, 16
    C, K = 4, 8
    R = S = 3
    stride, padding, dilation = (1, 1), (1, 1), (1, 1)
    num_active = 48

    k1, k2, k3, k4 = jax.random.split(key, 4)

    # unique deterministic active coordinates
    flat = jax.random.permutation(k1, B * H * W)[:num_active]
    b_idx = (flat // (H * W)).astype(jnp.int32)
    h_idx = ((flat // W) % H).astype(jnp.int32)
    w_idx = (flat % W).astype(jnp.int32)
    indices = jnp.stack([b_idx, h_idx, w_idx], axis=1)        # [N, 3]
    features = jax.random.normal(k2, (num_active, C), jnp.float32)

    # deterministic parameter init (module's __init__ shapes: [K,R,S,C] and [K])
    weight = jax.random.normal(k3, (K, R, S, C), jnp.float32) * 0.1
    bias = jax.random.normal(k4, (K,), jnp.float32) * 0.1

    out_feat, out_idx, P, Q = naive_submconv2d_pallas(
        features, indices, (H, W), B, weight, bias, stride, padding, dilation)
    out_feat = jax.block_until_ready(out_feat)

    # Reference with matched bf16 rounding of the MXU operands (f32 accumulate).
    feat_q = features.astype(jnp.bfloat16).astype(jnp.float32)
    w_q = weight.astype(jnp.bfloat16).astype(jnp.float32)
    ref = reference_submconv2d(feat_q, indices, H, W, B, w_q, bias,
                               stride, padding, dilation)

    assert out_feat.shape == (num_active, K)
    assert (P, Q) == (H, W)
    assert bool(jnp.all(out_idx == indices))
    assert bool(jnp.allclose(out_feat, ref, atol=1e-3, rtol=1e-3)), "mismatch vs reference"
    print("KERNEL_OK")
</pallas_src>

<mosaic_0001>
module attributes {stable_mosaic.version = 11 : i64} {
  func.func @_submconv_kernel(%arg0: i32, %arg1: memref<432xi32, #tpu.memory_space<smem>>, %arg2: memref<56x4xf32, #tpu.memory_space<vmem>>, %arg3: memref<128x128xbf16, #tpu.memory_space<vmem>>, %arg4: memref<1x128xf32, #tpu.memory_space<vmem>>, %arg5: memref<48x128xf32, #tpu.memory_space<vmem>>, %arg6: memref<48x128xf32, #tpu.memory_space<vmem>>) attributes {dimension_semantics = [#tpu.dimension_semantics<parallel>], iteration_bounds = array<i64: 1>, scalar_prefetch = 1 : i64, scratch_operands = 1 : i64, tpu.core_type = #tpu.core_type<tc>, window_params = [{pipeline_mode = #tpu.pipeline_mode<synchronous>, transform_indices = @transform_0, window_bounds = array<i64: 56, 4>}, {pipeline_mode = #tpu.pipeline_mode<synchronous>, transform_indices = @transform_1, window_bounds = array<i64: 128, 128>}, {pipeline_mode = #tpu.pipeline_mode<synchronous>, transform_indices = @transform_2, window_bounds = array<i64: 1, 128>}, {transform_indices = @transform_3, window_bounds = array<i64: 48, 128>}]} {
    %c432_i32 = arith.constant 432 : i32
    %0 = arith.muli %arg0, %c432_i32 : i32
    %cst = arith.constant 0.000000e+00 : f32
    %1 = vector.broadcast %cst : f32 to vector<48x128xf32>
    %c0 = arith.constant 0 : index
    %c0_0 = arith.constant 0 : index
    %2 = vector.load %arg6[%c0, %c0_0] : memref<48x128xf32, #tpu.memory_space<vmem>>, vector<48x128xf32>
    tpu.vector_store %arg6[%c0, %c0_0], %1 {strides = array<i32>} : memref<48x128xf32, #tpu.memory_space<vmem>>, vector<48x128xf32>,
    %c0_i32 = arith.constant 0 : i32
    %c48_i32 = arith.constant 48 : i32
    %3 = arith.addi %c0_i32, %c48_i32 : i32
    %c1_i32 = arith.constant 1 : i32
    scf.for %arg7 = %c0_i32 to %3 step %c1_i32  : i32 {
      %c9_i32 = arith.constant 9 : i32
      %12 = arith.muli %arg7, %c9_i32 : i32
      %13 = arith.addi %0, %12 : i32
      %c0_i32_11 = arith.constant 0 : i32
      %14 = arith.addi %13, %c0_i32_11 : i32
      %15 = arith.index_cast %14 : i32 to index
      %16 = memref.load %arg1[%15] : memref<432xi32, #tpu.memory_space<smem>>
      %17 = arith.index_cast %16 : i32 to index
      %c0_12 = arith.constant 0 : index
      %18 = vector.load %arg2[%17, %c0_12] : memref<56x4xf32, #tpu.memory_space<vmem>>, vector<1x4xf32>
      %19 = arith.index_cast %arg7 : i32 to index
      %c0_13 = arith.constant 0 : index
      %20 = vector.load %arg6[%19, %c0_13] : memref<48x128xf32, #tpu.memory_space<vmem>>, vector<1x4xf32>
      tpu.vector_store %arg6[%19, %c0_13], %18 {strides = array<i32>} : memref<48x128xf32, #tpu.memory_space<vmem>>, vector<1x4xf32>,
      %c1_i32_14 = arith.constant 1 : i32
      %21 = arith.addi %13, %c1_i32_14 : i32
      %22 = arith.index_cast %21 : i32 to index
      %23 = memref.load %arg1[%22] : memref<432xi32, #tpu.memory_space<smem>>
      %24 = arith.index_cast %23 : i32 to index
      %c0_15 = arith.constant 0 : index
      %25 = vector.load %arg2[%24, %c0_15] : memref<56x4xf32, #tpu.memory_space<vmem>>, vector<1x4xf32>
      %26 = arith.index_cast %arg7 : i32 to index
      %c4 = arith.constant 4 : index
      %27 = vector.load %arg6[%26, %c4] : memref<48x128xf32, #tpu.memory_space<vmem>>, vector<1x4xf32>
      tpu.vector_store %arg6[%26, %c4], %25 {strides = array<i32>} : memref<48x128xf32, #tpu.memory_space<vmem>>, vector<1x4xf32>,
      %c2_i32 = arith.constant 2 : i32
      %28 = arith.addi %13, %c2_i32 : i32
      %29 = arith.index_cast %28 : i32 to index
      %30 = memref.load %arg1[%29] : memref<432xi32, #tpu.memory_space<smem>>
      %31 = arith.index_cast %30 : i32 to index
      %c0_16 = arith.constant 0 : index
      %32 = vector.load %arg2[%31, %c0_16] : memref<56x4xf32, #tpu.memory_space<vmem>>, vector<1x4xf32>
      %33 = arith.index_cast %arg7 : i32 to index
      %c8 = arith.constant 8 : index
      %34 = vector.load %arg6[%33, %c8] : memref<48x128xf32, #tpu.memory_space<vmem>>, vector<1x4xf32>
      tpu.vector_store %arg6[%33, %c8], %32 {strides = array<i32>} : memref<48x128xf32, #tpu.memory_space<vmem>>, vector<1x4xf32>,
      %c3_i32 = arith.constant 3 : i32
      %35 = arith.addi %13, %c3_i32 : i32
      %36 = arith.index_cast %35 : i32 to index
      %37 = memref.load %arg1[%36] : memref<432xi32, #tpu.memory_space<smem>>
      %38 = arith.index_cast %37 : i32 to index
      %c0_17 = arith.constant 0 : index
      %39 = vector.load %arg2[%38, %c0_17] : memref<56x4xf32, #tpu.memory_space<vmem>>, vector<1x4xf32>
      %40 = arith.index_cast %arg7 : i32 to index
      %c12 = arith.constant 12 : index
      %41 = vector.load %arg6[%40, %c12] : memref<48x128xf32, #tpu.memory_space<vmem>>, vector<1x4xf32>
      tpu.vector_store %arg6[%40, %c12], %39 {strides = array<i32>} : memref<48x128xf32, #tpu.memory_space<vmem>>, vector<1x4xf32>,
      %c4_i32 = arith.constant 4 : i32
      %42 = arith.addi %13, %c4_i32 : i32
      %43 = arith.index_cast %42 : i32 to index
      %44 = memref.load %arg1[%43] : memref<432xi32, #tpu.memory_space<smem>>
      %45 = arith.index_cast %44 : i32 to index
      %c0_18 = arith.constant 0 : index
      %46 = vector.load %arg2[%45, %c0_18] : memref<56x4xf32, #tpu.memory_space<vmem>>, vector<1x4xf32>
      %47 = arith.index_cast %arg7 : i32 to index
      %c16 = arith.constant 16 : index
      %48 = vector.load %arg6[%47, %c16] : memref<48x128xf32, #tpu.memory_space<vmem>>, vector<1x4xf32>
      tpu.vector_store %arg6[%47, %c16], %46 {strides = array<i32>} : memref<48x128xf32, #tpu.memory_space<vmem>>, vector<1x4xf32>,
      %c5_i32 = arith.constant 5 : i32
      %49 = arith.addi %13, %c5_i32 : i32
      %50 = arith.index_cast %49 : i32 to index
      %51 = memref.load %arg1[%50] : memref<432xi32, #tpu.memory_space<smem>>
      %52 = arith.index_cast %51 : i32 to index
      %c0_19 = arith.constant 0 : index
      %53 = vector.load %arg2[%52, %c0_19] : memref<56x4xf32, #tpu.memory_space<vmem>>, vector<1x4xf32>
      %54 = arith.index_cast %arg7 : i32 to index
      %c20 = arith.constant 20 : index
      %55 = vector.load %arg6[%54, %c20] : memref<48x128xf32, #tpu.memory_space<vmem>>, vector<1x4xf32>
      tpu.vector_store %arg6[%54, %c20], %53 {strides = array<i32>} : memref<48x128xf32, #tpu.memory_space<vmem>>, vector<1x4xf32>,
      %c6_i32 = arith.constant 6 : i32
      %56 = arith.addi %13, %c6_i32 : i32
      %57 = arith.index_cast %56 : i32 to index
      %58 = memref.load %arg1[%57] : memref<432xi32, #tpu.memory_space<smem>>
      %59 = arith.index_cast %58 : i32 to index
      %c0_20 = arith.constant 0 : index
      %60 = vector.load %arg2[%59, %c0_20] : memref<56x4xf32, #tpu.memory_space<vmem>>, vector<1x4xf32>
      %61 = arith.index_cast %arg7 : i32 to index
      %c24 = arith.constant 24 : index
      %62 = vector.load %arg6[%61, %c24] : memref<48x128xf32, #tpu.memory_space<vmem>>, vector<1x4xf32>
      tpu.vector_store %arg6[%61, %c24], %60 {strides = array<i32>} : memref<48x128xf32, #tpu.memory_space<vmem>>, vector<1x4xf32>,
      %c7_i32 = arith.constant 7 : i32
      %63 = arith.addi %13, %c7_i32 : i32
      %64 = arith.index_cast %63 : i32 to index
      %65 = memref.load %arg1[%64] : memref<432xi32, #tpu.memory_space<smem>>
      %66 = arith.index_cast %65 : i32 to index
      %c0_21 = arith.constant 0 : index
      %67 = vector.load %arg2[%66, %c0_21] : memref<56x4xf32, #tpu.memory_space<vmem>>, vector<1x4xf32>
      %68 = arith.index_cast %arg7 : i32 to index
      %c28 = arith.constant 28 : index
      %69 = vector.load %arg6[%68, %c28] : memref<48x128xf32, #tpu.memory_space<vmem>>, vector<1x4xf32>
      tpu.vector_store %arg6[%68, %c28], %67 {strides = array<i32>} : memref<48x128xf32, #tpu.memory_space<vmem>>, vector<1x4xf32>,
      %c8_i32 = arith.constant 8 : i32
      %70 = arith.addi %13, %c8_i32 : i32
      %71 = arith.index_cast %70 : i32 to index
      %72 = memref.load %arg1[%71] : memref<432xi32, #tpu.memory_space<smem>>
      %73 = arith.index_cast %72 : i32 to index
      %c0_22 = arith.constant 0 : index
      %74 = vector.load %arg2[%73, %c0_22] : memref<56x4xf32, #tpu.memory_space<vmem>>, vector<1x4xf32>
      %75 = arith.index_cast %arg7 : i32 to index
      %c32 = arith.constant 32 : index
      %76 = vector.load %arg6[%75, %c32] : memref<48x128xf32, #tpu.memory_space<vmem>>, vector<1x4xf32>
      tpu.vector_store %arg6[%75, %c32], %74 {strides = array<i32>} : memref<48x128xf32, #tpu.memory_space<vmem>>, vector<1x4xf32>,
    }
    %c48_i32_1 = arith.constant 48 : i32
    %c0_2 = arith.constant 0 : index
    %c0_3 = arith.constant 0 : index
    %4 = vector.load %arg6[%c0_2, %c0_3] : memref<48x128xf32, #tpu.memory_space<vmem>>, vector<48x128xf32>
    %5 = arith.truncf %4 : vector<48x128xf32> to vector<48x128xbf16>
    %c0_4 = arith.constant 0 : index
    %c0_5 = arith.constant 0 : index
    %6 = vector.load %arg3[%c0_4, %c0_5] : memref<128x128xbf16, #tpu.memory_space<vmem>>, vector<128x128xbf16>
    %cst_6 = arith.constant dense<0.000000e+00> : vector<48x128xf32>
    %7 = tpu.matmul %5, %6, %cst_6 {dimension_numbers = #tpu.dot_dimension_numbers<[1], [0], [0], [1], [0, 0, 1, 1], [], []>} : vector<48x128xbf16>, vector<128x128xbf16>, vector<48x128xf32> -> vector<48x128xf32>
    %c0_7 = arith.constant 0 : index
    %c0_8 = arith.constant 0 : index
    %8 = vector.load %arg4[%c0_7, %c0_8] : memref<1x128xf32, #tpu.memory_space<vmem>>, vector<1x128xf32>
    %9 = vector.broadcast %8 : vector<1x128xf32> to vector<48x128xf32>
    %10 = arith.addf %7, %9 : vector<48x128xf32>
    %c0_9 = arith.constant 0 : index
    %c0_10 = arith.constant 0 : index
    %11 = vector.load %arg5[%c0_9, %c0_10] : memref<48x128xf32, #tpu.memory_space<vmem>>, vector<48x128xf32>
    tpu.vector_store %arg5[%c0_9, %c0_10], %10 {strides = array<i32>} : memref<48x128xf32, #tpu.memory_space<vmem>>, vector<48x128xf32>,
    return
  }
  func.func @transform_0(%arg0: i32, %arg1: memref<432xi32, #tpu.memory_space<smem>>) -> (i32, i32) {
    %c0_i32 = arith.constant 0 : i32
    %c0_i32_0 = arith.constant 0 : i32
    %c0_i32_1 = arith.constant 0 : i32
    return %c0_i32, %c0_i32_0 : i32, i32
  }
  func.func @transform_1(%arg0: i32, %arg1: memref<432xi32, #tpu.memory_space<smem>>) -> (i32, i32) {
    %c0_i32 = arith.constant 0 : i32
    %c0_i32_0 = arith.constant 0 : i32
    %c0_i32_1 = arith.constant 0 : i32
    return %c0_i32, %c0_i32_0 : i32, i32
  }
  func.func @transform_2(%arg0: i32, %arg1: memref<432xi32, #tpu.memory_space<smem>>) -> (i32, i32) {
    %c0_i32 = arith.constant 0 : i32
    %c0_i32_0 = arith.constant 0 : i32
    %c0_i32_1 = arith.constant 0 : i32
    return %c0_i32, %c0_i32_0 : i32, i32
  }
  func.func @transform_3(%arg0: i32, %arg1: memref<432xi32, #tpu.memory_space<smem>>) -> (i32, i32) {
    %c0_i32 = arith.constant 0 : i32
    %c0_i32_0 = arith.constant 0 : i32
    return %arg0, %c0_i32 : i32, i32
  }
}

</mosaic_0001>

<bundles_post_ra>
// kernel: tpu_custom_call.1
= control target key start
LH: loop header
LB: loop body
LE: loop exit
PB: predicated region body
PF: predicated region fallthrough
CT: control target
= control target key end

     0   :  { %s609_s0 = inlined_call_operand.vmem [shape: s32[432], index: 0, kind: input, shape index: {}]   ;;  %s610_s1 = inlined_call_operand.vmem [shape: f32[56,4], index: 1, kind: input, shape index: {}]   ;;  %s611_s2 = inlined_call_operand.hbm [shape: bf16[128,128], index: 2, kind: input, shape index: {}]   ;;  %s612_s3 = inlined_call_operand.vmem [shape: f32[1,128], index: 3, kind: input, shape index: {}]   ;;  %s613_s4 = inlined_call_operand.hbm [shape: f32[48,128], index: 4, kind: output, shape index: {}]  }
   0x1   :  { %s9_s17 = sshll.u32 %s609_s0, 4  ;;  %s10_s17 = int_to_ptr.vmem [resolvable:$true] %s9_s17 }
   0x2   :  { %s410_s18 = scalar_lea.vmem %s10_s17, 64  ;;  %p415_p1 = scmp.lt.s32.totalorder %s10_s17, %s10_s17 }
   0x3   :  { %p411_p0 = scmp.ne.s32.totalorder %s10_s17, %s410_s18  ;;  %p416_p2 = scmp.lt.s32.totalorder %s410_s18, %s410_s18 }
   0x5   :  { %p417_p3 = por %p416_p2, %p415_p1 }
   0x7   :  { %p418_p4 = pnand %p417_p3, %p411_p0 }
   0x9   :  { %421 = shalt.err (!%p418_p4)  }
   0xa   :  { %s476_s19 = smov [#allocation4]  }
   0xb   :  { %12 = dma.vmem_to_smem %s10_s17, 64, %s476_s19, [#allocation3] }
   0xc   :  { %466 = dma.done.wait [#allocation3], 64 }
   0xd   :  { %467 = vsyncadd [#allocation3], 4294967232 }
   0xe   :  { %14 = sfence }
   0xf   :  { %15 = vsyncpa [#allocation6], 0 }
  0x10   :  { %16 = vsyncpa [#allocation7], 0  ;;  %s477_s20 = smov [#allocation5]  }
  0x11   :  { %s24_s21 = sshll.u32 %s477_s20, 4  ;;  %s25_s21 = int_to_ptr.vmem [resolvable:$true] %s24_s21 }
  0x12   :  { %s430_s22 = scalar_lea.vmem %s25_s21, 1024  ;;  %p435_p6 = scmp.lt.s32.totalorder %s25_s21, %s25_s21 }
  0x13   :  { %p431_p5 = scmp.ne.s32.totalorder %s25_s21, %s430_s22  ;;  %p436_p7 = scmp.lt.s32.totalorder %s430_s22, %s430_s22 }
  0x15   :  { %p437_p8 = por %p436_p7, %p435_p6 }
  0x17   :  { %p438_p9 = pnand %p437_p8, %p431_p5 }
  0x19   :  { %441 = shalt.err (!%p438_p9)
}
  0x1a   :  { %s478_s0 = smov 64   ;;  %s479_s23 = smov 4  }
  0x1b   :  { %30 = dma.hbm_to_vmem [thread:$0]  %s611_s2, 1024, %s25_s21, [#allocation6], %s478_s0, %s478_s0, %s479_s23  }
  0x1c   :  { %468 = dma.done.wait [#allocation6], 1024  }
  0x1d   :  { %469 = vsyncadd [#allocation6], 4294966272  ;;  %v480_v0 = vmov 0.0   ;;  %s530_s26 = smov 0  }
  0x1e   :  { %38 = vst [vmem:[#allocation2] sm:$0xff] %v480_v0  ;;  %39 = vst [vmem:[#allocation2 + $0x8] sm:$0xff] %v480_v0 }
  0x1f   :  { %40 = vst [vmem:[#allocation2 + $0x10] sm:$0xff] %v480_v0  ;;  %41 = vst [vmem:[#allocation2 + $0x18] sm:$0xff] %v480_v0 }
  0x20   :  { %42 = vst [vmem:[#allocation2 + $0x20] sm:$0xff] %v480_v0  ;;  %43 = vst [vmem:[#allocation2 + $0x28] sm:$0xff] %v480_v0 }
  0x21 LB: > { %s536_s2 = smul.u32 9, %s474_s26  ;;  %s481_s21 = smov 4   ;;  %vm56_vm0 = vcmask 24576   ;;  %vm66_vm1 = vcmask 57376   ;;  %vm76_vm2 = vcmask 90176   ;;  %vm86_vm3 = vcmask 122976   ;;  %s474_s26 = sphi %s530_s26, %s49_s26  }
  0x22   : > { %s482_s25 = smov 12   ;;  %s485_s22 = smov 20   ;;  %vm96_vm4 = vcmask 155776   ;;  %vm106_vm5 = vcmask 188576   ;;  %vm116_vm6 = vcmask 221376   ;;  %vm126_vm7 = vcmask 254176  }
  0x23   : > { %s58_s27 = sadd.s32 1, %s536_s2  ;;  %s78_s28 = sadd.s32 3, %s536_s2  ;;  %vm136_vm8 = vcmask 286976  }
  0x24   : > { %s59_s29 = sld [smem:[#allocation4 + %s58_s27]]  ;;  %s68_s30 = sadd.s32 2, %s536_s2 }
  0x25   : > { %s79_s5 = sld [smem:[#allocation4 + %s78_s28]]  ;;  %s88_s6 = sadd.s32 4, %s536_s2 }
  0x26   : > { %s69_s7 = sld [smem:[#allocation4 + %s68_s30]]  ;;  %s98_s8 = sadd.s32 5, %s536_s2 }
  0x27   : > { %s89_s9 = sld [smem:[#allocation4 + %s88_s6]]  ;;  %s108_s10 = sadd.s32 6, %s536_s2 }
  0x28   : > { %s99_s11 = sld [smem:[#allocation4 + %s98_s8]]  ;;  %s118_s13 = sadd.s32 7, %s536_s2 }
  0x29   : > { %s109_s12 = sld [smem:[#allocation4 + %s108_s10]]  ;;  %s128_s24 = sadd.s32 8, %s536_s2 }
  0x2a   : > { %s60_s16 = scalar_lea.vmem %s610_s1, %s59_s29  ;;  %s548_s17 = sld [smem:[#allocation4 + %s118_s13]] }
  0x2b   : > { %v61_v1 = vld [vmem:[%s60_s16] sm:$0x1]  ;;  %s80_s20 = scalar_lea.vmem %s610_s1, %s79_s5  ;;  %s129_s30 = sld [smem:[#allocation4 + %s128_s24]] }
  0x2c   : > { %63 = vrot.lane.b32.xlu0 %v61_v1, %s481_s21  ;;  %v81_v2 = vld [vmem:[%s80_s20] sm:$0x1]  ;;  %s70_s23 = scalar_lea.vmem %s610_s1, %s69_s7  ;;  %s483_s7 = smov 8  }
  0x2d   : > { %83 = vrot.lane.b32.xlu1 %v81_v2, %s482_s25  ;;  %v71_v3 = vld [vmem:[%s70_s23] sm:$0x1]  ;;  %s90_s29 = scalar_lea.vmem %s610_s1, %s89_s9  ;;  %s52_s15 = sld [smem:[#allocation4 + %s536_s2]] }
  0x2e   : > { %v91_v4 = vld [vmem:[%s90_s29] sm:$0x1]  ;;  %s100_s8 = scalar_lea.vmem %s610_s1, %s99_s11  ;;  %s484_s16 = smov 16  }
  0x2f   : > { %s110_s14 = scalar_lea.vmem %s610_s1, %s109_s12  ;;  %v101_v5 = vld [vmem:[%s100_s8] sm:$0x1]  ;;  %s486_s0 = smov 24  }
  0x30   : > { %73 = vrot.lane.b32.xlu0 %v71_v3, %s483_s7  ;;  %v111_v6 = vld [vmem:[%s110_s14] sm:$0x1]  ;;  %s120_s19 = scalar_lea.vmem %s610_s1, %s548_s17  ;;  %s487_s24 = smov 28  }
  0x31   : > { %93 = vrot.lane.b32.xlu1 %v91_v4, %s484_s16  ;;  %s130_s11 = scalar_lea.vmem %s610_s1, %s129_s30  ;;  %v121_v7 = vld [vmem:[%s120_s19] sm:$0x1]  ;;  %s55_s25 = scalar_lea.vmem [#allocation2], %s474_s26 }
  0x32   : > { %v131_v8 = vld [vmem:[%s130_s11] sm:$0x1]  ;;  %s488_s17 = smov 32   ;;  %s49_s26 = sadd.s32 1, %s474_s26  }
  0x33   : > { %s53_s23 = scalar_lea.vmem %s610_s1, %s52_s15  ;;  %p46_p10 = scmp.ge.s32.totalorder %s49_s26, 48  }
  0x34   : > { %103 = vrot.lane.b32.xlu0 %v101_v5, %s485_s22  ;;  %v54_v9 = vld [vmem:[%s53_s23] sm:$0x1]  ;;  %361 = vmatprep.subr.bf16.mxu1 (%p46_p10), %v480_v0  ;;  %v402_v18 = vld [vmem:[#allocation5 + $0x38] sm:$0xff] (%p46_p10)   ;;  %vm489_vm9 = vmmov (%p46_p10), 0   ;;  %v404_v20 = vld [vmem:[#allocation5 + $0x28] sm:$0xff] (%p46_p10)   ;;  %s490_s27 = smov (%p46_p10), [#allocation8]  }
  0x35   : > { %113 = vrot.lane.b32.xlu1 %v111_v6, %s486_s0  ;;  %57 = vst.msk [vmem:[%s55_s25] sm:$0x1] %vm56_vm0, %v54_v9  ;;  %333 = vmatprep.subr.bf16.mxu0 (%p46_p10), %v480_v0  ;;  %v403_v19 = vld [vmem:[#allocation5 + $0x30] sm:$0xff] (%p46_p10)   ;;  %v405_v21 = vld [vmem:[#allocation5 + $0x20] sm:$0xff] (%p46_p10)   ;;  %v406_v22 = vld [vmem:[#allocation5 + $0x18] sm:$0xff] (%p46_p10)  }
  0x36   :  { %353 = vmatprep.mubr.msk.bf16.mxu1 (%p46_p10), %vm489_vm9, %v480_v0  ;;  %349 = vmatprep.mubr.msk.bf16.mxu0 (%p46_p10), %vm489_vm9, %v480_v0  ;;  %v407_v23 = vld [vmem:[#allocation5 + $0x10] sm:$0xff] (%p46_p10)   ;;  %v408_v24 = vld [vmem:[#allocation5 + $0x8] sm:$0xff] (%p46_p10)   ;;  %v409_v25 = vld [vmem:[#allocation5] sm:$0xff] (%p46_p10)  }
  0x37   :  { %369 = vmatpush3.bf16.msra.mxu1 (%p46_p10), %v402_v18  ;;  %334 = vmatpush3.bf16.msra.mxu0 (%p46_p10), %v402_v18  ;;  %v313_v35 = vld [vmem:[%s612_s3] ss:$0 sm:$0xff] (%p46_p10)  ;;  %s286_s3 = sshll.u32 (%p46_p10), %s490_s27, 4  ;;  %s287_s3 = int_to_ptr.vmem [resolvable:$true] %s286_s3 }
  0x38   : > { %123 = vrot.lane.b32.xlu0 %v121_v7, %s487_s24  ;;  %362 = vmatprep.subr.bf16.mxu1 (%p46_p10), %v480_v0  ;;  %s442_s28 = scalar_lea.vmem (%p46_p10), %s287_s3, 768  ;;  %p447_p12 = scmp.lt.s32.totalorder (%p46_p10), %s287_s3, %s287_s3 }
  0x39   : > { %133 = vrot.lane.b32.xlu1 %v131_v8, %s488_s17  ;;  %335 = vmatprep.subr.bf16.mxu0 (%p46_p10), %v480_v0  ;;  %p443_p11 = scmp.ne.s32.totalorder (%p46_p10), %s287_s3, %s442_s28  ;;  %p448_p13 = scmp.lt.s32.totalorder (%p46_p10), %s442_s28, %s442_s28 }
  0x3b   :  { %370 = vmatpush3.bf16.msra.mxu1 (%p46_p10), %v403_v19  ;;  %336 = vmatpush3.bf16.msra.mxu0 (%p46_p10), %v403_v19  ;;  %p449_p0 = por (%p46_p10), %p448_p13, %p447_p12 }
  0x3c   :  { %363 = vmatprep.subr.bf16.mxu1 (%p46_p10), %v480_v0  ;;  %337 = vmatprep.subr.bf16.mxu0 (%p46_p10), %v480_v0 }
  0x3d   :  { %p450_p1 = pnand (%p46_p10), %p449_p0, %p443_p11 }
  0x3f   :  { %371 = vmatpush3.bf16.msra.mxu1 (%p46_p10), %v404_v20  ;;  %338 = vmatpush3.bf16.msra.mxu0 (%p46_p10), %v404_v20 }
  0x40   :  { %364 = vmatprep.subr.bf16.mxu1 (%p46_p10), %v480_v0  ;;  %339 = vmatprep.subr.bf16.mxu0 (%p46_p10), %v480_v0 }
  0x43   :  { %372 = vmatpush3.bf16.msra.mxu1 (%p46_p10), %v405_v21  ;;  %340 = vmatpush3.bf16.msra.mxu0 (%p46_p10), %v405_v21 }
  0x44   :  { %365 = vmatprep.subr.bf16.mxu1 (%p46_p10), %v480_v0  ;;  %341 = vmatprep.subr.bf16.mxu0 (%p46_p10), %v480_v0 }
  0x47   :  { %373 = vmatpush3.bf16.msra.mxu1 (%p46_p10), %v406_v22  ;;  %342 = vmatpush3.bf16.msra.mxu0 (%p46_p10), %v406_v22 }
  0x48   :  { %366 = vmatprep.subr.bf16.mxu1 (%p46_p10), %v480_v0  ;;  %343 = vmatprep.subr.bf16.mxu0 (%p46_p10), %v480_v0 }
  0x4b   :  { %374 = vmatpush3.bf16.msra.mxu1 (%p46_p10), %v407_v23  ;;  %344 = vmatpush3.bf16.msra.mxu0 (%p46_p10), %v407_v23 }
  0x4c   :  { %367 = vmatprep.subr.bf16.mxu1 (%p46_p10), %v480_v0  ;;  %345 = vmatprep.subr.bf16.mxu0 (%p46_p10), %v480_v0 }
  0x4f   :  { %375 = vmatpush3.bf16.msra.mxu1 (%p46_p10), %v408_v24  ;;  %346 = vmatpush3.bf16.msra.mxu0 (%p46_p10), %v408_v24 }
  0x50   :  { %368 = vmatprep.subr.bf16.mxu1 (%p46_p10), %v480_v0  ;;  %347 = vmatprep.subr.bf16.mxu0 (%p46_p10), %v480_v0 }
  0x53   :  { %376 = vmatpush3.bf16.msra.mxu1 (%p46_p10), %v409_v25  ;;  %348 = vmatpush3.bf16.msra.mxu0 (%p46_p10), %v409_v25 }
  0x9e   : > { %v64_v10 = vpop.permute.xlu0 %63 }
  0x9f   : > { %67 = vst.msk [vmem:[%s55_s25] sm:$0x1] %vm66_vm1, %v64_v10  ;;  %v84_v11 = vpop.permute.xlu1 %83 }
  0xa2   : > { %v74_v12 = vpop.permute.xlu0 %73 }
  0xa3   : > { %77 = vst.msk [vmem:[%s55_s25] sm:$0x1] %vm76_vm2, %v74_v12  ;;  %v94_v13 = vpop.permute.xlu1 %93 }
  0xa4   : > { %87 = vst.msk [vmem:[%s55_s25] sm:$0x1] %vm86_vm3, %v84_v11 }
  0xa5   : > { %97 = vst.msk [vmem:[%s55_s25] sm:$0x1] %vm96_vm4, %v94_v13 }
  0xa6   : > { %v104_v14 = vpop.permute.xlu0 %103 }
  0xa7   : > { %107 = vst.msk [vmem:[%s55_s25] sm:$0x1] %vm106_vm5, %v104_v14  ;;  %v114_v15 = vpop.permute.xlu1 %113 }
  0xa8   : > { %117 = vst.msk [vmem:[%s55_s25] sm:$0x1] %vm116_vm6, %v114_v15  ;;  %48 = sbr.rel (!%p46_p10) target bundleno = 33 (0x21), region = 53 }
  0xaa   : > { %v124_v16 = vpop.permute.xlu0 %123 }
  0xab   : > { %127 = vst.msk [vmem:[%s55_s25] sm:$0x1] %vm126_vm7, %v124_v16  ;;  %v134_v17 = vpop.permute.xlu1 %133 }
  0xac   : > { %137 = vst.msk [vmem:[%s55_s25] sm:$0x1] %vm136_vm8, %v134_v17 }
  0xb3   :  { %v140_v26 = vld [vmem:[#allocation2 + $0x10] sm:$0xff]  ;;  %v141_v27 = vld [vmem:[#allocation2 + $0x18] sm:$0xff]  ;;  %v138_v28 = vld [vmem:[#allocation2] sm:$0xff] }
  0xb4   :  { %v139_v29 = vld [vmem:[#allocation2 + $0x8] sm:$0xff]  ;;  %v145_v30 = vpack.c.bf16 %v141_v27, %v140_v26  ;;  %v142_v32 = vld [vmem:[#allocation2 + $0x20] sm:$0xff] }
  0xb5   :  { %v144_v31 = vpack.c.bf16 %v139_v29, %v138_v28  ;;  %v143_v33 = vld [vmem:[#allocation2 + $0x28] sm:$0xff] }
  0xb6   :  { %354 = vmatmul.mubr.bf16.vlgmr.msra.gmra.mxu1 %v145_v30  ;;  %v146_v34 = vpack.c.bf16 %v143_v33, %v142_v32 }
  0xb7   :  { %350 = vmatmul.mubr.bf16.vlgmr.msra.gmra.mxu0 %v144_v31  ;;  %357 = vmatprep.mubr.msk.bf16.mxu1 %vm489_vm9, %v480_v0 }
  0xbe   :  { %358 = vmatmul.mubr.bf16.gmra.mxu1 %v146_v34 }
 0x176   :  { %v260_v36 = vpop.f32.mrf.mxu1 }
 0x177   :  { %v252_v37 = vpop.f32.mrf.mxu0  ;;  %v261_v38 = vadd.f32 %v313_v35, %v260_v36 }
 0x178   :  { %v253_v39 = vadd.f32 %v313_v35, %v252_v37  ;;  %v355_v40 = vpop.f32.mrf.mxu1 }
 0x179   :  { %v351_v41 = vpop.f32.mrf.mxu0  ;;  %277 = vst [vmem:[#allocation8 + $0x10] sm:$0xff] %v261_v38 }
 0x17a   :  { %275 = vst [vmem:[#allocation8] sm:$0xff] %v253_v39  ;;  %v263_v42 = vpop.f32.mrf.mxu1 }
 0x17b   :  { %v255_v43 = vpop.f32.mrf.mxu0  ;;  %v264_v44 = vadd.f32 %v313_v35, %v263_v42 }
 0x17c   :  { %v256_v45 = vadd.f32 %v313_v35, %v255_v43  ;;  %v356_v46 = vpop.f32.mrf.mxu1 }
 0x17d   :  { %v352_v47 = vpop.f32.mrf.mxu0  ;;  %278 = vst [vmem:[#allocation8 + $0x18] sm:$0xff] %v264_v44 }
 0x17e   :  { %276 = vst [vmem:[#allocation8 + $0x8] sm:$0xff] %v256_v45  ;;  %v268_v48 = vpop.f32.mrf.mxu1 }
 0x17f   :  { %v269_v49 = vadd.f32 %v313_v35, %v268_v48 }
 0x180   :  { %v359_v50 = vpop.f32.mrf.mxu1 }
 0x181   :  { %279 = vst [vmem:[#allocation8 + $0x20] sm:$0xff] %v269_v49 }
 0x182   :  { %v271_v51 = vpop.f32.mrf.mxu1 }
 0x183   :  { %v272_v52 = vadd.f32 %v313_v35, %v271_v51 }
 0x184   :  { %v360_v53 = vpop.f32.mrf.mxu1 }
 0x185   :  { %280 = vst [vmem:[#allocation8 + $0x28] sm:$0xff] %v272_v52 }
 0x186   :  { %453 = shalt.err (!%p450_p1)
}
 0x187   :  { %s491_s29 = smov 128   ;;  %s492_s30 = smov 8  }
 0x188   :  { %292 = dma.vmem_to_hbm [thread:$0]  %s287_s3, 768, %s613_s4, [#allocation7], %s491_s29, %s491_s29, %s492_s30  }
 0x189   :  { %470 = dma.done.wait [#allocation7], 768  }
 0x18a   :  { %471 = vsyncadd [#allocation7], 4294966528 }
 0x18b   :  { %296 = vsyncpa [#allocation6], 1 }
 0x18c   :  { %297 = vsyncpa [#allocation7], 1 }

</bundles_post_ra>
